<compile_context>
chip_gen: v7x
topology: tpu7x:2x2x1
jax: 0.10.0
libtpu: 0.0.40
codegen_flags: <defaults>
</compile_context>

<pallas_src>
import jax
import jax.numpy as jnp
from jax import lax
from jax.experimental import pallas as pl
from jax.experimental.pallas import tpu as pltpu
import numpy as np

KH, KW = 3, 3
CIN, COUT = 3, 6
COUT_PAD = 8  # full sublane group -> unmasked (8,128) stores


def _conv2d_im2col_kernel(x_ref, w_ref, b_ref, o_ref):
    """Single fused contraction over all taps and input channels.

    x_ref: (K_pad, flat_pad)      wrapper-built im2col tap stack (lane-dense)
    w_ref: (Cout_pad, K_pad)      flattened weights, zero-padded
    b_ref: (Cout_pad, 1)          bias column, zero-padded
    o_ref: (Cout_pad, flat_pad)   lane-dense output slab
    """
    acc = jnp.dot(
        w_ref[...], x_ref[...],
        preferred_element_type=jnp.float32,
        precision=lax.Precision.HIGHEST,
    )
    o_ref[...] = (acc + b_ref[...]).astype(o_ref.dtype)


@jax.jit
def conv2d_pallas(x_nchw, w_oihw, bias):
    """x_nchw: (N, Cin, H, W), w_oihw: (Cout, Cin, KH, KW), bias: (Cout,)."""
    n, cin, h, w = x_nchw.shape
    cout, _, kh, kw = w_oihw.shape
    ho, wo = h - kh + 1, w - kw + 1

    flat = n * h * w
    flat_pad = ((flat + 127) // 128) * 128          # lane-tile aligned columns
    k = cin * kh * kw
    k_pad = ((k + 7) // 8) * 8                      # sublane aligned contraction dim
    cout_pad = COUT_PAD
    needed = flat + (kh - 1) * w + (kw - 1)         # max read index + 1 (no OOB)

    # Channel-major, spatially-flattened input: column c = n*H*W + i*W + j.
    x_flat = jnp.transpose(x_nchw, (1, 0, 2, 3)).reshape(cin, flat)
    x_flat = jnp.pad(x_flat, ((0, 0), (0, needed - flat)))

    # Wrapper-built im2col tap stack.  Row order = (cin, kh, kw), matching
    # w_oihw.reshape(Cout, Cin*KH*KW).  Columns where the sliding window runs
    # off the valid region produce garbage outputs that the final slice drops.
    rows = []
    for i in range(kh):
        for j in range(kw):
            shift = i * w + j
            rows.append(lax.slice_in_dim(x_flat, shift, shift + flat, axis=1))
    taps = jnp.stack(rows, axis=1).reshape(cin * kh * kw, flat)     # (K, flat)
    taps = jnp.pad(taps, ((0, k_pad - k), (0, flat_pad - flat)))

    # Weights / bias flattened and zero-padded to the kernel slab shapes.
    w2d = jnp.pad(w_oihw.reshape(cout, k), ((0, cout_pad - cout), (0, k_pad - k)))
    b_col = jnp.pad(bias, (0, cout_pad - cout)).reshape(cout_pad, 1)

    out_slab = pl.pallas_call(
        _conv2d_im2col_kernel,
        out_shape=jax.ShapeDtypeStruct((cout_pad, flat_pad), x_nchw.dtype),
        # Single invocation (no grid): every operand is a whole-array VMEM block.
        in_specs=[pl.BlockSpec(memory_space=pltpu.MemorySpace.VMEM)] * 3,
        out_specs=pl.BlockSpec(memory_space=pltpu.MemorySpace.VMEM),
    )(taps, w2d, b_col)

    # (Cout_pad, flat_pad) -> valid channels/columns -> (Cout, N, H, W) -> NCHW.
    out = out_slab[:cout, :flat].reshape(cout, n, h, w)[:, :, :ho, :wo]
    return jnp.transpose(out, (1, 0, 2, 3))


if __name__ == "__main__":
    key = jax.random.PRNGKey(0)
    kx, kwt, kb = jax.random.split(key, 3)

    # Small deterministic inputs consistent with Conv2d(3, 6, 3): N=2, C=3, H=W=16.
    x = jax.random.normal(kx, (2, CIN, 16, 16), dtype=jnp.float32)
    weight = jax.random.normal(kwt, (COUT, CIN, KH, KW), dtype=jnp.float32) * 0.1
    bias = jax.random.normal(kb, (COUT,), dtype=jnp.float32) * 0.1

    out = conv2d_pallas(x, weight, bias)
    out = jax.block_until_ready(out)

    # Reference (plain JAX) for sanity check.
    ref = lax.conv_general_dilated(
        x, weight, window_strides=(1, 1), padding="VALID",
        dimension_numbers=("NCHW", "OIHW", "NCHW"),
        precision=lax.Precision.HIGHEST,
    ) + bias[None, :, None, None]

    assert out.shape == (2, COUT, 14, 14), out.shape
    np.testing.assert_allclose(np.asarray(out), np.asarray(ref), atol=1e-4, rtol=1e-4)
    print("KERNEL_OK")
</pallas_src>

<mosaic_0001>
module attributes {stable_mosaic.version = 11 : i64} {
  func.func @_conv2d_im2col_kernel(%arg0: memref<32x512xf32, #tpu.memory_space<vmem>>, %arg1: memref<8x32xf32, #tpu.memory_space<vmem>>, %arg2: memref<8x1xf32, #tpu.memory_space<vmem>>, %arg3: memref<8x512xf32, #tpu.memory_space<vmem>>) attributes {dimension_semantics = [], scalar_prefetch = 0 : i64, scratch_operands = 0 : i64, tpu.core_type = #tpu.core_type<tc>} {
    %c0 = arith.constant 0 : index
    %c0_0 = arith.constant 0 : index
    %0 = vector.load %arg1[%c0, %c0_0] : memref<8x32xf32, #tpu.memory_space<vmem>>, vector<8x32xf32>
    %c0_1 = arith.constant 0 : index
    %c0_2 = arith.constant 0 : index
    %1 = vector.load %arg0[%c0_1, %c0_2] : memref<32x512xf32, #tpu.memory_space<vmem>>, vector<32x512xf32>
    %cst = arith.constant dense<0.000000e+00> : vector<8x512xf32>
    %2 = tpu.matmul %0, %1, %cst {dimension_numbers = #tpu.dot_dimension_numbers<[1], [0], [0], [1], [0, 0, 1, 1], [], []>, precision = #tpu.contract_precision<fp32>} : vector<8x32xf32>, vector<32x512xf32>, vector<8x512xf32> -> vector<8x512xf32>
    %c0_3 = arith.constant 0 : index
    %c0_4 = arith.constant 0 : index
    %3 = vector.load %arg2[%c0_3, %c0_4] : memref<8x1xf32, #tpu.memory_space<vmem>>, vector<8x1xf32>
    %4 = vector.broadcast %3 : vector<8x1xf32> to vector<8x512xf32>
    %5 = arith.addf %2, %4 : vector<8x512xf32>
    %c0_5 = arith.constant 0 : index
    %c0_6 = arith.constant 0 : index
    %6 = vector.load %arg3[%c0_5, %c0_6] : memref<8x512xf32, #tpu.memory_space<vmem>>, vector<8x512xf32>
    tpu.vector_store %arg3[%c0_5, %c0_6], %5 {strides = array<i32>} : memref<8x512xf32, #tpu.memory_space<vmem>>, vector<8x512xf32>,
    return
  }
}

</mosaic_0001>

<bundles_post_ra>
// kernel: conv2d_pallas.1
= control target key start
LH: loop header
LB: loop body
LE: loop exit
PB: predicated region body
PF: predicated region fallthrough
CT: control target
= control target key end

     0   :  { %v1258_v3 = vmov 0.0   ;;  %vm37_vm0 = vcmask 261120   ;;  %v1259_v10 = vmov 0   ;;  %s1559_s0 = inlined_call_operand.vmem [shape: f32[32,512], index: 0, kind: input, shape index: {}]   ;;  %s1560_s2 = inlined_call_operand.vmem [shape: f32[8,1], index: 2, kind: input, shape index: {}]   ;;  %s1561_s1 = inlined_call_operand.vmem [shape: f32[8,32], index: 1, kind: input, shape index: {}]   ;;  %s1562_s3 = inlined_call_operand.vmem [shape: f32[8,512], index: 3, kind: output, shape index: {}]  }
   0x1   :  { %v16_v0 = vld [vmem:[%s1559_s0 + $0x8] sm:$0xff]  ;;  %v18_v2 = vld [vmem:[%s1559_s0 + $0x18] sm:$0xff]  ;;  %113 = vmatprep.mubr.f32.mxu0 %v1258_v3  ;;  %656 = vmatprep.mubr.f32.mxu1 %v1258_v3  ;;  %v15_v8 = vld [vmem:[%s1559_s0] sm:$0xff] }
   0x2   :  { %v20_v1 = vld [vmem:[%s1559_s0 + $0x28] sm:$0xff]  ;;  %v41_v4 = vand.u32 4294901760, %v16_v0  ;;  %v22_v6 = vld [vmem:[%s1559_s0 + $0x38] sm:$0xff]  ;;  %v584_v7 = vand.u32 4294901760, %v18_v2  ;;  %v19_v9 = vld [vmem:[%s1559_s0 + $0x20] sm:$0xff]  ;;  %1257 = vset.pattern.permute.xlu0 %v1259_v10  ;;  %v43_v12 = vand.u32 4294901760, %v15_v8 }
   0x3   :  { %v45_v5 = vand.u32 4294901760, %v20_v1  ;;  %v588_v11 = vand.u32 4294901760, %v22_v6  ;;  %v47_v13 = vand.u32 4294901760, %v19_v9  ;;  %v17_v14 = vld [vmem:[%s1559_s0 + $0x10] sm:$0xff]  ;;  %v24_v16 = vld [vmem:[%s1559_s0 + $0x48] sm:$0xff]  ;;  %v26_v22 = vld [vmem:[%s1559_s0 + $0x58] sm:$0xff] }
   0x4   :  { %v21_v15 = vld [vmem:[%s1559_s0 + $0x30] sm:$0xff]  ;;  %v1311_v18 = vsub.f32 %v16_v0, %v41_v4  ;;  %v1315_v20 = vsub.f32 %v18_v2, %v584_v7  ;;  %v28_v21 = vld [vmem:[%s1559_s0 + $0x68] sm:$0xff]  ;;  %v30_v23 = vld [vmem:[%s1559_s0 + $0x78] sm:$0xff]  ;;  %v1332_v27 = vsub.f32 %v15_v8, %v43_v12  ;;  %v586_v30 = vand.u32 4294901760, %v17_v14 }
   0x5   :  { %v1309_v17 = vpack.c.bf16 %v45_v5, %v41_v4  ;;  %v1313_v19 = vsub.f32 %v20_v1, %v45_v5  ;;  %v1326_v24 = vpack.c.bf16 %v588_v11, %v584_v7  ;;  %v1328_v25 = vsub.f32 %v22_v6, %v588_v11  ;;  %v23_v28 = vld [vmem:[%s1559_s0 + $0x40] sm:$0xff]  ;;  %v25_v39 = vld [vmem:[%s1559_s0 + $0x50] sm:$0xff] }
   0x6   :  { %v1330_v26 = vpack.c.bf16 %v47_v13, %v43_v12  ;;  %v1338_v29 = vsub.f32 %v19_v9, %v47_v13  ;;  %v590_v31 = vand.u32 4294901760, %v21_v15  ;;  %v49_v32 = vand.u32 4294901760, %v24_v16  ;;  %v31_v33 = vld [vmem:[%s1560_s2] sm:$0xff]  ;;  %v29_v44 = vld [vmem:[%s1559_s0 + $0x70] sm:$0xff] }
   0x7   :  { %1136 = vmatprep.subr.bf16.mxu0 %v1309_v17  ;;  %1184 = vmatprep.subr.bf16.mxu1 %v1326_v24  ;;  %v53_v34 = vand.u32 4294901760, %v28_v21  ;;  %v592_v35 = vand.u32 4294901760, %v26_v22  ;;  %v596_v36 = vand.u32 4294901760, %v30_v23  ;;  %v27_v37 = vld [vmem:[%s1559_s0 + $0x60] sm:$0xff]  ;;  %v51_v38 = vand.u32 4294901760, %v23_v28 }
   0x8   :  { %1138 = vmatpush1.bf16.msra.mxu0 %v1330_v26  ;;  %v1351_v40 = vpack.c.bf16 %v590_v31, %v586_v30  ;;  %v1353_v41 = vsub.f32 %v17_v14, %v586_v30  ;;  %v1355_v42 = vsub.f32 %v21_v15, %v590_v31  ;;  %v1357_v43 = vsub.f32 %v24_v16, %v49_v32  ;;  %v14_v45 = vld [vmem:[%s1561_s1] sm:$0xff] }
   0x9   :  { %34 = vperm.xlu0 %1257, %v31_v33   ;;  %v1365_v46 = vpack.c.bf16 %v53_v34, %v49_v32  ;;  %v1367_v47 = vsub.f32 %v28_v21, %v53_v34  ;;  %v1369_v48 = vpack.c.bf16 %v596_v36, %v592_v35  ;;  %v1371_v49 = vsub.f32 %v26_v22, %v592_v35 }
   0xa   :  { %1186 = vmatpush1.bf16.msra.mxu1 %v1351_v40  ;;  %v1374_v50 = vsub.f32 %v30_v23, %v596_v36  ;;  %v55_v51 = vand.u32 4294901760, %v27_v37  ;;  %v1376_v52 = vsub.f32 %v23_v28, %v51_v38  ;;  %v594_v53 = vand.u32 4294901760, %v25_v39 }
   0xb   :  { %1140 = vmatprep.subr.bf16.mxu0 %v1365_v46  ;;  %1188 = vmatprep.subr.bf16.mxu1 %v1369_v48  ;;  %v598_v54 = vand.u32 4294901760, %v29_v44  ;;  %v39_v55 = vsel %vm37_vm0, %v14_v45, 0  ;;  %v127_v56 = vand.u32 4294901760, %v1311_v18  ;;  %v139_v57 = vand.u32 4294901760, %v1313_v19 }
   0xc   :  { %v1383_v58 = vpack.c.bf16 %v55_v51, %v51_v38  ;;  %v1385_v59 = vsub.f32 %v27_v37, %v55_v51  ;;  %v1387_v60 = vsub.f32 %v25_v39, %v594_v53  ;;  %v1389_v61 = vand.u32 4294901760, %v39_v55 }
   0xd   :  { %v1391_v62 = vpack.c.bf16 %v598_v54, %v594_v53  ;;  %v1393_v63 = vsub.f32 %v29_v44, %v598_v54  ;;  %v128_v0 = vsub.f32 %v1311_v18, %v127_v56  ;;  %v140_v1 = vsub.f32 %v1313_v19, %v139_v57 }
   0xe   :  { %1142 = vmatpush1.bf16.msra.mxu0 %v1383_v58  ;;  %v1403_v2 = vsub.f32 %v39_v55, %v1389_v61  ;;  %v670_v4 = vand.u32 4294901760, %v1315_v20  ;;  %v682_v5 = vand.u32 4294901760, %v1328_v25  ;;  %v133_v6 = vand.u32 4294901760, %v1332_v27 }
   0xf   :  { %1190 = vmatpush1.bf16.msra.mxu1 %v1391_v62  ;;  %v129_v7 = vand.u32 4294901760, %v128_v0  ;;  %v141_v8 = vand.u32 4294901760, %v140_v1  ;;  %v145_v9 = vand.u32 4294901760, %v1338_v29  ;;  %v676_v10 = vand.u32 4294901760, %v1353_v41 }
  0x10   :  { %v1412_v11 = vand.u32 4294901760, %v1403_v2  ;;  %v671_v12 = vsub.f32 %v1315_v20, %v670_v4  ;;  %v683_v13 = vsub.f32 %v1328_v25, %v682_v5  ;;  %v134_v14 = vsub.f32 %v1332_v27, %v133_v6 }
  0x11   :  { %v1143_v15 = vpack.c.bf16 %v141_v8, %v129_v7  ;;  %v146_v16 = vsub.f32 %v1338_v29, %v145_v9  ;;  %v677_v21 = vsub.f32 %v1353_v41, %v676_v10  ;;  %v688_v22 = vand.u32 4294901760, %v1355_v42 }
  0x12   :  { %v117_v23 = vsub.f32 %v1403_v2, %v1412_v11  ;;  %v672_v28 = vand.u32 4294901760, %v671_v12  ;;  %v684_v30 = vand.u32 4294901760, %v683_v13  ;;  %v135_v31 = vand.u32 4294901760, %v134_v14 }
  0x13   :  { %1144 = vmatprep.subr.bf16.mxu0 %v1143_v15  ;;  %v147_v32 = vand.u32 4294901760, %v146_v16  ;;  %v678_v33 = vand.u32 4294901760, %v677_v21  ;;  %v689_v34 = vsub.f32 %v1355_v42, %v688_v22  ;;  %v151_v35 = vand.u32 4294901760, %v1357_v43 }
  0x14   :  { %v118_v36 = vand.u32 4294901760, %v117_v23  ;;  %v1191_v37 = vpack.c.bf16 %v684_v30, %v672_v28  ;;  %v163_v38 = vand.u32 4294901760, %v1367_v47  ;;  %v694_v39 = vand.u32 4294901760, %v1371_v49 }
  0x15   :  { %v1145_v44 = vpack.c.bf16 %v147_v32, %v135_v31  ;;  %v690_v45 = vand.u32 4294901760, %v689_v34  ;;  %v152_v51 = vsub.f32 %v1357_v43, %v151_v35  ;;  %v706_v53 = vand.u32 4294901760, %v1374_v50 }
  0x16   :  { %119 = vmatmul.mubr.f32.vlgmr.msra.gmra.mrb[0].mxu0 %v118_v36  ;;  %662 = vmatmul.mubr.f32.vlgmr.msra.gmra.mrb[0].mxu1 %v118_v36  ;;  %v164_v54 = vsub.f32 %v1367_v47, %v163_v38  ;;  %v695_v55 = vsub.f32 %v1371_v49, %v694_v39  ;;  %v157_v0 = vand.u32 4294901760, %v1376_v52  ;;  %v169_v1 = vand.u32 4294901760, %v1385_v59 }
  0x17   :  { %1192 = vmatprep.subr.bf16.mxu1 %v1191_v37  ;;  %1146 = vmatpush1.bf16.msra.mxu0 %v1145_v44  ;;  %v1193_v7 = vpack.c.bf16 %v690_v45, %v678_v33  ;;  %v153_v8 = vand.u32 4294901760, %v152_v51  ;;  %v707_v12 = vsub.f32 %v1374_v50, %v706_v53  ;;  %v700_v13 = vand.u32 4294901760, %v1387_v60 }
  0x18   :  { %v165_v14 = vand.u32 4294901760, %v164_v54  ;;  %v696_v15 = vand.u32 4294901760, %v695_v55  ;;  %v158_v16 = vsub.f32 %v1376_v52, %v157_v0  ;;  %v170_v21 = vsub.f32 %v1385_v59, %v169_v1  ;;  %229 = vmatprep.mubr.f32.mxu0 %v1258_v3  ;;  %772 = vmatprep.mubr.f32.mxu1 %v1258_v3 }
  0x19   :  { %1194 = vmatpush1.bf16.msra.mxu1 %v1193_v7  ;;  %v708_v23 = vand.u32 4294901760, %v707_v12  ;;  %v701_v28 = vsub.f32 %v1387_v60, %v700_v13  ;;  %v712_v30 = vand.u32 4294901760, %v1393_v63  ;;  %v1151_v44 = vpack.c.bf16 %v1313_v19, %v1311_v18 }
  0x1a   :  { %v1147_v31 = vpack.c.bf16 %v165_v14, %v153_v8  ;;  %v159_v32 = vand.u32 4294901760, %v158_v16  ;;  %v171_v33 = vand.u32 4294901760, %v170_v21  ;;  %v1199_v54 = vpack.c.bf16 %v1328_v25, %v1315_v20 }
  0x1b   :  { %v1195_v34 = vpack.c.bf16 %v708_v23, %v696_v15  ;;  %v702_v36 = vand.u32 4294901760, %v701_v28  ;;  %v713_v37 = vsub.f32 %v1393_v63, %v712_v30  ;;  %v1153_v55 = vpack.c.bf16 %v1338_v29, %v1332_v27 }
  0x1c   :  { %1148 = vmatprep.subr.bf16.mxu0 %v1147_v31  ;;  %v1149_v45 = vpack.c.bf16 %v171_v33, %v159_v32  ;;  %v1155_v8 = vpack.c.bf16 %v1367_v47, %v1357_v43  ;;  %v1201_v12 = vpack.c.bf16 %v1355_v42, %v1353_v41  ;;  %v1203_v14 = vpack.c.bf16 %v1374_v50, %v1371_v49 }
  0x1d   :  { %1196 = vmatprep.subr.bf16.mxu1 %v1195_v34  ;;  %v714_v51 = vand.u32 4294901760, %v713_v37  ;;  %v1157_v15 = vpack.c.bf16 %v1385_v59, %v1376_v52  ;;  %v1205_v16 = vpack.c.bf16 %v1393_v63, %v1387_v60  ;;  %v1167_v63 = vpack.c.bf16 %v139_v57, %v127_v56 }
  0x1e   :  { %1150 = vmatpush1.bf16.msra.mxu0 %v1149_v45  ;;  %v1215_v21 = vpack.c.bf16 %v682_v5, %v670_v4  ;;  %v1169_v18 = vpack.c.bf16 %v145_v9, %v133_v6  ;;  %v1171_v19 = vpack.c.bf16 %v163_v38, %v151_v35  ;;  %v1217_v20 = vpack.c.bf16 %v688_v22, %v676_v10 }
  0x1f   :  { %v1197_v7 = vpack.c.bf16 %v714_v51, %v702_v36  ;;  %1152 = vmatprep.subr.bf16.mxu0 %v1151_v44  ;;  %v1219_v25 = vpack.c.bf16 %v706_v53, %v694_v39  ;;  %v1173_v27 = vpack.c.bf16 %v169_v1, %v157_v0  ;;  %v1221_v29 = vpack.c.bf16 %v712_v30, %v700_v13 }
  0x21   :  { %1198 = vmatpush1.bf16.msra.mxu1 %v1197_v7  ;;  %231 = vmatmul.mubr.f32.vlgmr.msra.gmra.mrb[0].mxu0 %v1389_v61 }
  0x22   :  { %1200 = vmatprep.subr.bf16.mxu1 %v1199_v54  ;;  %1154 = vmatpush1.bf16.msra.mxu0 %v1153_v55 }
  0x23   :  { %1156 = vmatprep.subr.bf16.mxu0 %v1155_v8  ;;  %317 = vmatprep.mubr.f32.mxu0 %v1258_v3 }
  0x24   :  { %774 = vmatmul.mubr.f32.vlgmr.msra.gmra.mrb[0].mxu1 %v1389_v61 }
  0x25   :  { %1202 = vmatpush1.bf16.msra.mxu1 %v1201_v12  ;;  %860 = vmatprep.mubr.f32.mxu1 %v1258_v3 }
  0x26   :  { %1204 = vmatprep.subr.bf16.mxu1 %v1203_v14  ;;  %1158 = vmatpush1.bf16.msra.mxu0 %v1157_v15 }
  0x27   :  { %1160 = vmatprep.subr.bf16.mxu0 %v1309_v17 }
  0x29   :  { %1206 = vmatpush1.bf16.msra.mxu1 %v1205_v16  ;;  %320 = vmatmul.mubr.f32.vlgmr.msra.gmra.mrb[0].mxu0 %v1403_v2 }
  0x2a   :  { %1208 = vmatprep.subr.bf16.mxu1 %v1326_v24  ;;  %1162 = vmatpush1.bf16.msra.mxu0 %v1330_v26 }
  0x2b   :  { %1164 = vmatprep.subr.bf16.mxu0 %v1365_v46  ;;  %398 = vmatprep.mubr.f32.mxu0 %v1258_v3 }
  0x2c   :  { %863 = vmatmul.mubr.f32.vlgmr.msra.gmra.mrb[0].mxu1 %v1403_v2 }
  0x2d   :  { %1210 = vmatpush1.bf16.msra.mxu1 %v1351_v40  ;;  %941 = vmatprep.mubr.f32.mxu1 %v1258_v3 }
  0x2e   :  { %1212 = vmatprep.subr.bf16.mxu1 %v1369_v48  ;;  %1166 = vmatpush1.bf16.msra.mxu0 %v1383_v58 }
  0x2f   :  { %1168 = vmatprep.subr.bf16.mxu0 %v1167_v63 }
  0x31   :  { %1214 = vmatpush1.bf16.msra.mxu1 %v1391_v62  ;;  %402 = vmatmul.mubr.f32.vlgmr.msra.gmra.mrb[0].mxu0 %v1412_v11 }
  0x32   :  { %1216 = vmatprep.subr.bf16.mxu1 %v1215_v21  ;;  %1170 = vmatpush1.bf16.msra.mxu0 %v1169_v18 }
  0x33   :  { %1172 = vmatprep.subr.bf16.mxu0 %v1171_v19  ;;  %496 = vmatprep.mubr.f32.mxu0 %v1258_v3 }
  0x34   :  { %945 = vmatmul.mubr.f32.vlgmr.msra.gmra.mrb[0].mxu1 %v1412_v11 }
  0x35   :  { %1218 = vmatpush1.bf16.msra.mxu1 %v1217_v20  ;;  %1039 = vmatprep.mubr.f32.mxu1 %v1258_v3 }
  0x36   :  { %1220 = vmatprep.subr.bf16.mxu1 %v1219_v25  ;;  %1174 = vmatpush1.bf16.msra.mxu0 %v1173_v27 }
  0x37   :  { %1176 = vmatprep.subr.bf16.mxu0 %v1309_v17 }
  0x39   :  { %1222 = vmatpush1.bf16.msra.mxu1 %v1221_v29  ;;  %498 = vmatmul.mubr.f32.vlgmr.msra.gmra.mrb[0].mxu0 %v1389_v61 }
  0x3a   :  { %1224 = vmatprep.subr.bf16.mxu1 %v1326_v24  ;;  %1178 = vmatpush1.bf16.msra.mxu0 %v1330_v26 }
  0x3b   :  { %1180 = vmatprep.subr.bf16.mxu0 %v1365_v46  ;;  %576 = vmatprep.mubr.f32.mxu0 %v1258_v3 }
  0x3c   :  { %1041 = vmatmul.mubr.f32.vlgmr.msra.gmra.mrb[0].mxu1 %v1389_v61 }
  0x3d   :  { %1226 = vmatpush1.bf16.msra.mxu1 %v1351_v40  ;;  %1119 = vmatprep.mubr.f32.mxu1 %v1258_v3 }
  0x3e   :  { %1228 = vmatprep.subr.bf16.mxu1 %v1369_v48  ;;  %1182 = vmatpush1.bf16.msra.mxu0 %v1383_v58 }
  0x41   :  { %1230 = vmatpush1.bf16.msra.mxu1 %v1391_v62  ;;  %578 = vmatmul.mubr.f32.vlgmr.msra.gmra.mrb[0].mxu0 %v1389_v61 }
  0x44   :  { %1121 = vmatmul.mubr.f32.vlgmr.msra.gmra.mrb[0].mxu1 %v1389_v61 }
  0x88   :  { %v35_v17 = vpop.permute.xlu0 %34 }
 0x114   :  { %v579_v24 = vpop.f32.mrb[0].mxu0 }
 0x115   :  { %v1231_v26 = vadd.f32 %v579_v24, %v35_v17  ;;  %v581_v41 = vpop.f32.mrb[1].mxu0 }
 0x116   :  { %v1232_v42 = vadd.f32 %v581_v41, %v35_v17 }
 0x117   :  { %1127 = vst [vmem:[%s1562_s3] sm:$0xff] %v1231_v26  ;;  %v1122_v3 = vpop.f32.mrb[0].mxu1 }
 0x118   :  { %v1233_v40 = vadd.f32 %v1122_v3, %v35_v17  ;;  %1128 = vst [vmem:[%s1562_s3 + $0x8] sm:$0xff] %v1232_v42  ;;  %v1124_v43 = vpop.f32.mrb[1].mxu1 }
 0x119   :  { %v1234_v46 = vadd.f32 %v1124_v43, %v35_v17 }
 0x11a   :  { %1129 = vst [vmem:[%s1562_s3 + $0x10] sm:$0xff] %v1233_v40 }
 0x11b   :  { %1130 = vst [vmem:[%s1562_s3 + $0x18] sm:$0xff] %v1234_v46 }

</bundles_post_ra>
